<compile_context>
chip_gen: v7x
topology: tpu7x:2x2x1
jax: 0.10.0
libtpu: 0.0.40
codegen_flags: <defaults>
</compile_context>

<pallas_src>
import numpy as np
import jax
import jax.numpy as jnp
from jax.experimental import pallas as pl
from jax.experimental.pallas import tpu as pltpu

# ----------------------------------------------------------------------------
# Model dimensions (small, fixed by the example input).
# ----------------------------------------------------------------------------
BATCH = 2
C_IN = 4
C1 = 16
C2 = 32
HW = 16                       # input spatial size (16x16)
NUM_CLASSES = 10
FC_IN = (HW // 4) * (HW // 4) * C2   # 512

H_PAD = HW + 2                # padded rows per image for conv1 input (18)
P_PAD = HW // 2 + 2           # padded rows per image for conv2 input (10)


# ----------------------------------------------------------------------------
# Fused Pallas kernel: conv1+ReLU+pool -> conv2+ReLU+pool -> FC, whole batch in
# a single grid step.  All activations stay in vregs / a small VMEM scratch.
# ----------------------------------------------------------------------------
def _fused_cnn_kernel(x_ref,      # (B*(HW+2), HW*C_IN)          bf16  rows = (img, padded h), cols = (w, cin)
                      bw1_ref,    # (3, HW*C_IN, HW*C1)          bf16  banded conv1 weights (per H tap)
                      b1_ref,     # (1, HW*C1)                   f32
                      bw2_ref,    # (3, (HW//2)*C1, (HW//2)*C2)  bf16  banded conv2 weights
                      b2_ref,     # (1, (HW//2)*C2)              f32
                      wfc_ref,    # (FC_IN, NUM_CLASSES)         bf16
                      bfc_ref,    # (1, NUM_CLASSES)             f32
                      o_ref,      # (B, NUM_CLASSES)             f32
                      p1_ref):    # (B*P_PAD, (HW//2)*C1)        f32 scratch: H-padded conv2 input
    f32 = jnp.float32
    bf16 = jnp.bfloat16
    batch = o_ref.shape[0]

    # ---- conv1 (3x3 SAME, C_IN -> C1): 3 banded MXU matmuls over the vertical taps,
    #      all batch images stacked along the row (sublane) axis.
    nr1 = batch * H_PAD - 2                                   # 34 output rows (2 per-boundary garbage)
    h1 = jnp.dot(x_ref[pl.ds(0, nr1), :], bw1_ref[0], preferred_element_type=f32)
    h1 = h1 + jnp.dot(x_ref[pl.ds(1, nr1), :], bw1_ref[1], preferred_element_type=f32)
    h1 = h1 + jnp.dot(x_ref[pl.ds(2, nr1), :], bw1_ref[2], preferred_element_type=f32)
    h1 = jnp.maximum(h1 + b1_ref[...], 0.0)                   # (nr1, 256): cols = (w parity, wo, c1)

    # ---- fused 2x2 max-pool: W direction via the two parity column halves,
    #      H direction via row pairs, written straight into the zero-padded
    #      conv2 input scratch (per-image pad rows stay zero = implicit H padding).
    half1 = (HW // 2) * C1                                    # 128
    wp1 = jnp.maximum(h1[:, :half1], h1[:, half1:])           # (nr1, 128): cols = (wo, c1)
    p1_ref[...] = jnp.zeros_like(p1_ref)
    for b in range(batch):
        for ho in range(HW // 2):
            src = b * H_PAD + 2 * ho                          # valid conv1 rows for image b
            dst = b * P_PAD + ho + 1                          # leave rows b*P_PAD and b*P_PAD+9 zero
            p1_ref[pl.ds(dst, 1), :] = jnp.maximum(
                wp1[src:src + 1, :], wp1[src + 1:src + 2, :])

    # ---- conv2 (3x3 SAME, C1 -> C2): 3 banded MXU matmuls over the vertical taps
    nr2 = batch * P_PAD - 2                                   # 18 output rows
    h2 = jnp.dot(p1_ref[pl.ds(0, nr2), :].astype(bf16), bw2_ref[0],
                 preferred_element_type=f32)
    h2 = h2 + jnp.dot(p1_ref[pl.ds(1, nr2), :].astype(bf16), bw2_ref[1],
                      preferred_element_type=f32)
    h2 = h2 + jnp.dot(p1_ref[pl.ds(2, nr2), :].astype(bf16), bw2_ref[2],
                      preferred_element_type=f32)
    h2 = jnp.maximum(h2 + b2_ref[...], 0.0)                   # (nr2, 256): cols = (x parity, xo, c2)

    # ---- fused 2x2 max-pool + flatten into (batch, 512) (yo, xo, c2)-ordered features
    half2 = (HW // 4) * C2                                    # 128
    wp2 = jnp.maximum(h2[:, :half2], h2[:, half2:])           # (nr2, 128): cols = (xo, c2)
    feat_rows = []
    for b in range(batch):
        chunks = []
        for yo in range(HW // 4):
            src = b * P_PAD + 2 * yo                          # valid conv2 rows for image b
            chunks.append(jnp.maximum(wp2[src:src + 1, :], wp2[src + 1:src + 2, :]))
        feat_rows.append(jnp.concatenate(chunks, axis=1))     # (1, 512)
    feat = jnp.concatenate(feat_rows, axis=0)                 # (batch, 512) f32

    # ---- FC head, whole batch in one MXU matmul
    logits = jnp.dot(feat.astype(bf16), wfc_ref[...], preferred_element_type=f32)
    o_ref[...] = logits + bfc_ref[...]


# ----------------------------------------------------------------------------
# Host-side weight packing: banded (block-Toeplitz) per-H-tap conv matrices.
# Output columns are permuted to (w-parity, wo, cout) so the kernel's W-direction
# 2x2 pooling is a single elementwise max of two 128-lane halves.
# ----------------------------------------------------------------------------
def _banded_conv_matrix(w_hwio: np.ndarray, w_out: int) -> np.ndarray:
    kh, kw, cin, cout = w_hwio.shape
    assert (kh, kw) == (3, 3)
    cols = np.arange(w_out * cout).reshape(w_out, cout)
    perm = np.concatenate([cols[0::2].reshape(-1), cols[1::2].reshape(-1)])
    out = np.zeros((3, w_out * cin, w_out * cout), np.float32)
    for di in range(3):
        m = np.zeros((w_out * cin, w_out * cout), np.float32)
        for w in range(w_out):
            for dj in range(3):
                wr = w + dj - 1                      # implicit zero padding along W
                if 0 <= wr < w_out:
                    m[wr * cin:(wr + 1) * cin, w * cout:(w + 1) * cout] = w_hwio[di, dj]
        out[di] = m[:, perm]
    return out


def init_raw_params(key):
    """Canonical (HWIO) synthetic weights, snapped to the bf16 grid."""
    k1, k2, k3, k4, k5, k6 = jax.random.split(key, 6)
    snap = lambda a: a.astype(jnp.bfloat16).astype(jnp.float32)
    return {
        "w1": snap(jax.random.normal(k1, (3, 3, C_IN, C1), jnp.float32) / np.sqrt(9 * C_IN)),
        "b1": snap(0.1 * jax.random.normal(k4, (C1,), jnp.float32)),
        "w2": snap(jax.random.normal(k2, (3, 3, C1, C2), jnp.float32) / np.sqrt(9 * C1)),
        "b2": snap(0.1 * jax.random.normal(k5, (C2,), jnp.float32)),
        "w_fc": snap(jax.random.normal(k3, (FC_IN, NUM_CLASSES), jnp.float32) / np.sqrt(FC_IN)),
        "b_fc": snap(0.1 * jax.random.normal(k6, (NUM_CLASSES,), jnp.float32)),
    }


def pack_params(raw):
    w1 = np.asarray(raw["w1"], np.float32)
    w2 = np.asarray(raw["w2"], np.float32)
    return {
        "bw1": jnp.asarray(_banded_conv_matrix(w1, HW), jnp.bfloat16),          # (3, 64, 256)
        "b1row": jnp.asarray(np.tile(np.asarray(raw["b1"], np.float32), HW)[None, :]),       # (1, 256)
        "bw2": jnp.asarray(_banded_conv_matrix(w2, HW // 2), jnp.bfloat16),     # (3, 128, 256)
        "b2row": jnp.asarray(np.tile(np.asarray(raw["b2"], np.float32), HW // 2)[None, :]),  # (1, 256)
        "wfc": jnp.asarray(raw["w_fc"], jnp.bfloat16),                          # (512, 10)
        "bfcrow": jnp.asarray(raw["b_fc"], jnp.float32)[None, :],               # (1, 10)
    }


# ----------------------------------------------------------------------------
# Forward pass: one tiny XLA prep fusion + ONE single-step fused pallas_call.
# ----------------------------------------------------------------------------
def forward(params, x_nchw):
    n, cin, hh, ww = x_nchw.shape
    assert (cin, hh, ww) == (C_IN, HW, HW)
    x = jnp.transpose(x_nchw, (0, 2, 3, 1))                   # NCHW -> NHWC
    x = jnp.pad(x, ((0, 0), (1, 1), (0, 0), (0, 0)))          # pad H only (W pad folded into bw1)
    x2d = x.reshape(n * H_PAD, HW * C_IN).astype(jnp.bfloat16)  # batch stacked along rows

    out = pl.pallas_call(
        _fused_cnn_kernel,
        out_shape=jax.ShapeDtypeStruct((n, NUM_CLASSES), jnp.float32),
        grid=(1,),
        in_specs=[
            pl.BlockSpec((n * H_PAD, HW * C_IN), lambda i: (0, 0)),
            pl.BlockSpec(params["bw1"].shape, lambda i: (0, 0, 0)),
            pl.BlockSpec(params["b1row"].shape, lambda i: (0, 0)),
            pl.BlockSpec(params["bw2"].shape, lambda i: (0, 0, 0)),
            pl.BlockSpec(params["b2row"].shape, lambda i: (0, 0)),
            pl.BlockSpec(params["wfc"].shape, lambda i: (0, 0)),
            pl.BlockSpec(params["bfcrow"].shape, lambda i: (0, 0)),
        ],
        out_specs=pl.BlockSpec((n, NUM_CLASSES), lambda i: (0, 0)),
        scratch_shapes=[pltpu.VMEM((n * P_PAD, (HW // 2) * C1), jnp.float32)],
        compiler_params=pltpu.CompilerParams(dimension_semantics=("arbitrary",)),
    )(x2d, params["bw1"], params["b1row"], params["bw2"], params["b2row"],
      params["wfc"], params["bfcrow"])
    return out


# ----------------------------------------------------------------------------
# Pure-JAX reference (same bf16 rounding points) for a correctness check.
# ----------------------------------------------------------------------------
def reference_forward(raw, x_nchw):
    f32, bf16 = jnp.float32, jnp.bfloat16
    dn = ("NHWC", "HWIO", "NHWC")
    h = jnp.transpose(x_nchw, (0, 2, 3, 1)).astype(bf16).astype(f32)
    h = jax.lax.conv_general_dilated(h, raw["w1"], window_strides=(1, 1),
                                     padding="SAME", dimension_numbers=dn)
    h = jnp.maximum(h + raw["b1"], 0.0)
    n, hh, ww, c = h.shape
    h = h.reshape(n, hh // 2, 2, ww // 2, 2, c).max(axis=(2, 4))
    h = h.astype(bf16).astype(f32)
    h = jax.lax.conv_general_dilated(h, raw["w2"], window_strides=(1, 1),
                                     padding="SAME", dimension_numbers=dn)
    h = jnp.maximum(h + raw["b2"], 0.0)
    n, hh, ww, c = h.shape
    h = h.reshape(n, hh // 2, 2, ww // 2, 2, c).max(axis=(2, 4))
    h = h.astype(bf16).astype(f32)
    return h.reshape(n, -1) @ raw["w_fc"] + raw["b_fc"]


# TODO(synk): federated bookkeeping (nets_list management, loc_update, checkpoint
# loading, copy_nets2_prevnets) is host-side orchestration with no kernel analogue.

if __name__ == "__main__":
    key = jax.random.PRNGKey(0)
    kx, kp = jax.random.split(key)
    x = jax.random.normal(kx, (BATCH, C_IN, HW, HW), jnp.float32)   # NCHW, as PyTorch would pass
    raw = init_raw_params(kp)
    params = pack_params(raw)

    out = jax.jit(forward)(params, x)
    jax.block_until_ready(out)
    assert out.shape == (BATCH, NUM_CLASSES) and out.dtype == jnp.float32

    ref = jax.jit(reference_forward)(raw, x)
    err = float(jnp.max(jnp.abs(out - ref)))
    assert err < 5e-2, f"kernel mismatch vs reference: max abs err = {err}"
    print("KERNEL_OK")
</pallas_src>

<mosaic_0001>
module attributes {stable_mosaic.version = 11 : i64} {
  func.func @_fused_cnn_kernel(%arg0: i32, %arg1: memref<36x64xbf16, #tpu.memory_space<vmem>>, %arg2: memref<3x64x256xbf16, #tpu.memory_space<vmem>>, %arg3: memref<1x256xf32, #tpu.memory_space<vmem>>, %arg4: memref<3x128x256xbf16, #tpu.memory_space<vmem>>, %arg5: memref<1x256xf32, #tpu.memory_space<vmem>>, %arg6: memref<512x10xbf16, #tpu.memory_space<vmem>>, %arg7: memref<1x10xf32, #tpu.memory_space<vmem>>, %arg8: memref<2x10xf32, #tpu.memory_space<vmem>>, %arg9: memref<20x128xf32, #tpu.memory_space<vmem>>) attributes {dimension_semantics = [#tpu.dimension_semantics<arbitrary>], iteration_bounds = array<i64: 1>, scalar_prefetch = 0 : i64, scratch_operands = 1 : i64, tpu.core_type = #tpu.core_type<tc>, window_params = [{pipeline_mode = #tpu.pipeline_mode<synchronous>, transform_indices = @transform_0, window_bounds = array<i64: 36, 64>}, {pipeline_mode = #tpu.pipeline_mode<synchronous>, transform_indices = @transform_1, window_bounds = array<i64: 3, 64, 256>}, {pipeline_mode = #tpu.pipeline_mode<synchronous>, transform_indices = @transform_2, window_bounds = array<i64: 1, 256>}, {pipeline_mode = #tpu.pipeline_mode<synchronous>, transform_indices = @transform_3, window_bounds = array<i64: 3, 128, 256>}, {pipeline_mode = #tpu.pipeline_mode<synchronous>, transform_indices = @transform_4, window_bounds = array<i64: 1, 256>}, {pipeline_mode = #tpu.pipeline_mode<synchronous>, transform_indices = @transform_5, window_bounds = array<i64: 512, 10>}, {pipeline_mode = #tpu.pipeline_mode<synchronous>, transform_indices = @transform_6, window_bounds = array<i64: 1, 10>}, {pipeline_mode = #tpu.pipeline_mode<synchronous>, transform_indices = @transform_7, window_bounds = array<i64: 2, 10>}]} {
    %c0 = arith.constant 0 : index
    %c0_0 = arith.constant 0 : index
    %0 = vector.load %arg1[%c0, %c0_0] : memref<36x64xbf16, #tpu.memory_space<vmem>>, vector<34x64xbf16>
    %c0_1 = arith.constant 0 : index
    %c0_2 = arith.constant 0 : index
    %c0_3 = arith.constant 0 : index
    %1 = vector.load %arg2[%c0_1, %c0_2, %c0_3] : memref<3x64x256xbf16, #tpu.memory_space<vmem>>, vector<1x64x256xbf16>
    %2 = vector.shape_cast %1 : vector<1x64x256xbf16> to vector<64x256xbf16>
    %cst = arith.constant dense<0.000000e+00> : vector<34x256xf32>
    %3 = tpu.matmul %0, %2, %cst {dimension_numbers = #tpu.dot_dimension_numbers<[1], [0], [0], [1], [0, 0, 1, 1], [], []>} : vector<34x64xbf16>, vector<64x256xbf16>, vector<34x256xf32> -> vector<34x256xf32>
    %c1 = arith.constant 1 : index
    %c0_4 = arith.constant 0 : index
    %4 = vector.load %arg1[%c1, %c0_4] : memref<36x64xbf16, #tpu.memory_space<vmem>>, vector<34x64xbf16>
    %c1_5 = arith.constant 1 : index
    %c0_6 = arith.constant 0 : index
    %c0_7 = arith.constant 0 : index
    %5 = vector.load %arg2[%c1_5, %c0_6, %c0_7] : memref<3x64x256xbf16, #tpu.memory_space<vmem>>, vector<1x64x256xbf16>
    %6 = vector.shape_cast %5 : vector<1x64x256xbf16> to vector<64x256xbf16>
    %cst_8 = arith.constant dense<0.000000e+00> : vector<34x256xf32>
    %7 = tpu.matmul %4, %6, %cst_8 {dimension_numbers = #tpu.dot_dimension_numbers<[1], [0], [0], [1], [0, 0, 1, 1], [], []>} : vector<34x64xbf16>, vector<64x256xbf16>, vector<34x256xf32> -> vector<34x256xf32>
    %8 = arith.addf %3, %7 : vector<34x256xf32>
    %c2 = arith.constant 2 : index
    %c0_9 = arith.constant 0 : index
    %9 = vector.load %arg1[%c2, %c0_9] : memref<36x64xbf16, #tpu.memory_space<vmem>>, vector<34x64xbf16>
    %c2_10 = arith.constant 2 : index
    %c0_11 = arith.constant 0 : index
    %c0_12 = arith.constant 0 : index
    %10 = vector.load %arg2[%c2_10, %c0_11, %c0_12] : memref<3x64x256xbf16, #tpu.memory_space<vmem>>, vector<1x64x256xbf16>
    %11 = vector.shape_cast %10 : vector<1x64x256xbf16> to vector<64x256xbf16>
    %cst_13 = arith.constant dense<0.000000e+00> : vector<34x256xf32>
    %12 = tpu.matmul %9, %11, %cst_13 {dimension_numbers = #tpu.dot_dimension_numbers<[1], [0], [0], [1], [0, 0, 1, 1], [], []>} : vector<34x64xbf16>, vector<64x256xbf16>, vector<34x256xf32> -> vector<34x256xf32>
    %13 = arith.addf %8, %12 : vector<34x256xf32>
    %c0_14 = arith.constant 0 : index
    %c0_15 = arith.constant 0 : index
    %14 = vector.load %arg3[%c0_14, %c0_15] : memref<1x256xf32, #tpu.memory_space<vmem>>, vector<1x256xf32>
    %15 = vector.broadcast %14 : vector<1x256xf32> to vector<34x256xf32>
    %16 = arith.addf %13, %15 : vector<34x256xf32>
    %cst_16 = arith.constant 0.000000e+00 : f32
    %17 = vector.broadcast %cst_16 : f32 to vector<34x256xf32>
    %18 = arith.maximumf %16, %17 : vector<34x256xf32>
    %19 = vector.extract_strided_slice %18 {offsets = [0, 0], sizes = [34, 128], strides = [1, 1]} : vector<34x256xf32> to vector<34x128xf32>
    %20 = vector.extract_strided_slice %18 {offsets = [0, 128], sizes = [34, 128], strides = [1, 1]} : vector<34x256xf32> to vector<34x128xf32>
    %21 = arith.maximumf %19, %20 : vector<34x128xf32>
    %cst_17 = arith.constant 0.000000e+00 : f32
    %22 = vector.broadcast %cst_17 : f32 to vector<20x128xf32>
    %c0_18 = arith.constant 0 : index
    %c0_19 = arith.constant 0 : index
    %23 = vector.load %arg9[%c0_18, %c0_19] : memref<20x128xf32, #tpu.memory_space<vmem>>, vector<20x128xf32>
    tpu.vector_store %arg9[%c0_18, %c0_19], %22 {strides = array<i32>} : memref<20x128xf32, #tpu.memory_space<vmem>>, vector<20x128xf32>,
    %24 = vector.extract_strided_slice %21 {offsets = [0, 0], sizes = [1, 128], strides = [1, 1]} : vector<34x128xf32> to vector<1x128xf32>
    %25 = vector.extract_strided_slice %21 {offsets = [1, 0], sizes = [1, 128], strides = [1, 1]} : vector<34x128xf32> to vector<1x128xf32>
    %26 = arith.maximumf %24, %25 : vector<1x128xf32>
    %c1_20 = arith.constant 1 : index
    %c0_21 = arith.constant 0 : index
    %27 = vector.load %arg9[%c1_20, %c0_21] : memref<20x128xf32, #tpu.memory_space<vmem>>, vector<1x128xf32>
    tpu.vector_store %arg9[%c1_20, %c0_21], %26 {strides = array<i32>} : memref<20x128xf32, #tpu.memory_space<vmem>>, vector<1x128xf32>,
    %28 = vector.extract_strided_slice %21 {offsets = [2, 0], sizes = [1, 128], strides = [1, 1]} : vector<34x128xf32> to vector<1x128xf32>
    %29 = vector.extract_strided_slice %21 {offsets = [3, 0], sizes = [1, 128], strides = [1, 1]} : vector<34x128xf32> to vector<1x128xf32>
    %30 = arith.maximumf %28, %29 : vector<1x128xf32>
    %c2_22 = arith.constant 2 : index
    %c0_23 = arith.constant 0 : index
    %31 = vector.load %arg9[%c2_22, %c0_23] : memref<20x128xf32, #tpu.memory_space<vmem>>, vector<1x128xf32>
    tpu.vector_store %arg9[%c2_22, %c0_23], %30 {strides = array<i32>} : memref<20x128xf32, #tpu.memory_space<vmem>>, vector<1x128xf32>,
    %32 = vector.extract_strided_slice %21 {offsets = [4, 0], sizes = [1, 128], strides = [1, 1]} : vector<34x128xf32> to vector<1x128xf32>
    %33 = vector.extract_strided_slice %21 {offsets = [5, 0], sizes = [1, 128], strides = [1, 1]} : vector<34x128xf32> to vector<1x128xf32>
    %34 = arith.maximumf %32, %33 : vector<1x128xf32>
    %c3 = arith.constant 3 : index
    %c0_24 = arith.constant 0 : index
    %35 = vector.load %arg9[%c3, %c0_24] : memref<20x128xf32, #tpu.memory_space<vmem>>, vector<1x128xf32>
    tpu.vector_store %arg9[%c3, %c0_24], %34 {strides = array<i32>} : memref<20x128xf32, #tpu.memory_space<vmem>>, vector<1x128xf32>,
    %36 = vector.extract_strided_slice %21 {offsets = [6, 0], sizes = [1, 128], strides = [1, 1]} : vector<34x128xf32> to vector<1x128xf32>
    %37 = vector.extract_strided_slice %21 {offsets = [7, 0], sizes = [1, 128], strides = [1, 1]} : vector<34x128xf32> to vector<1x128xf32>
    %38 = arith.maximumf %36, %37 : vector<1x128xf32>
    %c4 = arith.constant 4 : index
    %c0_25 = arith.constant 0 : index
    %39 = vector.load %arg9[%c4, %c0_25] : memref<20x128xf32, #tpu.memory_space<vmem>>, vector<1x128xf32>
    tpu.vector_store %arg9[%c4, %c0_25], %38 {strides = array<i32>} : memref<20x128xf32, #tpu.memory_space<vmem>>, vector<1x128xf32>,
    %40 = vector.extract_strided_slice %21 {offsets = [8, 0], sizes = [1, 128], strides = [1, 1]} : vector<34x128xf32> to vector<1x128xf32>
    %41 = vector.extract_strided_slice %21 {offsets = [9, 0], sizes = [1, 128], strides = [1, 1]} : vector<34x128xf32> to vector<1x128xf32>
    %42 = arith.maximumf %40, %41 : vector<1x128xf32>
    %c5 = arith.constant 5 : index
    %c0_26 = arith.constant 0 : index
    %43 = vector.load %arg9[%c5, %c0_26] : memref<20x128xf32, #tpu.memory_space<vmem>>, vector<1x128xf32>
    tpu.vector_store %arg9[%c5, %c0_26], %42 {strides = array<i32>} : memref<20x128xf32, #tpu.memory_space<vmem>>, vector<1x128xf32>,
    %44 = vector.extract_strided_slice %21 {offsets = [10, 0], sizes = [1, 128], strides = [1, 1]} : vector<34x128xf32> to vector<1x128xf32>
    %45 = vector.extract_strided_slice %21 {offsets = [11, 0], sizes = [1, 128], strides = [1, 1]} : vector<34x128xf32> to vector<1x128xf32>
    %46 = arith.maximumf %44, %45 : vector<1x128xf32>
    %c6 = arith.constant 6 : index
    %c0_27 = arith.constant 0 : index
    %47 = vector.load %arg9[%c6, %c0_27] : memref<20x128xf32, #tpu.memory_space<vmem>>, vector<1x128xf32>
    tpu.vector_store %arg9[%c6, %c0_27], %46 {strides = array<i32>} : memref<20x128xf32, #tpu.memory_space<vmem>>, vector<1x128xf32>,
    %48 = vector.extract_strided_slice %21 {offsets = [12, 0], sizes = [1, 128], strides = [1, 1]} : vector<34x128xf32> to vector<1x128xf32>
    %49 = vector.extract_strided_slice %21 {offsets = [13, 0], sizes = [1, 128], strides = [1, 1]} : vector<34x128xf32> to vector<1x128xf32>
    %50 = arith.maximumf %48, %49 : vector<1x128xf32>
    %c7 = arith.constant 7 : index
    %c0_28 = arith.constant 0 : index
    %51 = vector.load %arg9[%c7, %c0_28] : memref<20x128xf32, #tpu.memory_space<vmem>>, vector<1x128xf32>
    tpu.vector_store %arg9[%c7, %c0_28], %50 {strides = array<i32>} : memref<20x128xf32, #tpu.memory_space<vmem>>, vector<1x128xf32>,
    %52 = vector.extract_strided_slice %21 {offsets = [14, 0], sizes = [1, 128], strides = [1, 1]} : vector<34x128xf32> to vector<1x128xf32>
    %53 = vector.extract_strided_slice %21 {offsets = [15, 0], sizes = [1, 128], strides = [1, 1]} : vector<34x128xf32> to vector<1x128xf32>
    %54 = arith.maximumf %52, %53 : vector<1x128xf32>
    %c8 = arith.constant 8 : index
    %c0_29 = arith.constant 0 : index
    %55 = vector.load %arg9[%c8, %c0_29] : memref<20x128xf32, #tpu.memory_space<vmem>>, vector<1x128xf32>
    tpu.vector_store %arg9[%c8, %c0_29], %54 {strides = array<i32>} : memref<20x128xf32, #tpu.memory_space<vmem>>, vector<1x128xf32>,
    %56 = vector.extract_strided_slice %21 {offsets = [18, 0], sizes = [1, 128], strides = [1, 1]} : vector<34x128xf32> to vector<1x128xf32>
    %57 = vector.extract_strided_slice %21 {offsets = [19, 0], sizes = [1, 128], strides = [1, 1]} : vector<34x128xf32> to vector<1x128xf32>
    %58 = arith.maximumf %56, %57 : vector<1x128xf32>
    %c11 = arith.constant 11 : index
    %c0_30 = arith.constant 0 : index
    %59 = vector.load %arg9[%c11, %c0_30] : memref<20x128xf32, #tpu.memory_space<vmem>>, vector<1x128xf32>
    tpu.vector_store %arg9[%c11, %c0_30], %58 {strides = array<i32>} : memref<20x128xf32, #tpu.memory_space<vmem>>, vector<1x128xf32>,
    %60 = vector.extract_strided_slice %21 {offsets = [20, 0], sizes = [1, 128], strides = [1, 1]} : vector<34x128xf32> to vector<1x128xf32>
    %61 = vector.extract_strided_slice %21 {offsets = [21, 0], sizes = [1, 128], strides = [1, 1]} : vector<34x128xf32> to vector<1x128xf32>
    %62 = arith.maximumf %60, %61 : vector<1x128xf32>
    %c12 = arith.constant 12 : index
    %c0_31 = arith.constant 0 : index
    %63 = vector.load %arg9[%c12, %c0_31] : memref<20x128xf32, #tpu.memory_space<vmem>>, vector<1x128xf32>
    tpu.vector_store %arg9[%c12, %c0_31], %62 {strides = array<i32>} : memref<20x128xf32, #tpu.memory_space<vmem>>, vector<1x128xf32>,
    %64 = vector.extract_strided_slice %21 {offsets = [22, 0], sizes = [1, 128], strides = [1, 1]} : vector<34x128xf32> to vector<1x128xf32>
    %65 = vector.extract_strided_slice %21 {offsets = [23, 0], sizes = [1, 128], strides = [1, 1]} : vector<34x128xf32> to vector<1x128xf32>
    %66 = arith.maximumf %64, %65 : vector<1x128xf32>
    %c13 = arith.constant 13 : index
    %c0_32 = arith.constant 0 : index
    %67 = vector.load %arg9[%c13, %c0_32] : memref<20x128xf32, #tpu.memory_space<vmem>>, vector<1x128xf32>
    tpu.vector_store %arg9[%c13, %c0_32], %66 {strides = array<i32>} : memref<20x128xf32, #tpu.memory_space<vmem>>, vector<1x128xf32>,
    %68 = vector.extract_strided_slice %21 {offsets = [24, 0], sizes = [1, 128], strides = [1, 1]} : vector<34x128xf32> to vector<1x128xf32>
    %69 = vector.extract_strided_slice %21 {offsets = [25, 0], sizes = [1, 128], strides = [1, 1]} : vector<34x128xf32> to vector<1x128xf32>
    %70 = arith.maximumf %68, %69 : vector<1x128xf32>
    %c14 = arith.constant 14 : index
    %c0_33 = arith.constant 0 : index
    %71 = vector.load %arg9[%c14, %c0_33] : memref<20x128xf32, #tpu.memory_space<vmem>>, vector<1x128xf32>
    tpu.vector_store %arg9[%c14, %c0_33], %70 {strides = array<i32>} : memref<20x128xf32, #tpu.memory_space<vmem>>, vector<1x128xf32>,
    %72 = vector.extract_strided_slice %21 {offsets = [26, 0], sizes = [1, 128], strides = [1, 1]} : vector<34x128xf32> to vector<1x128xf32>
    %73 = vector.extract_strided_slice %21 {offsets = [27, 0], sizes = [1, 128], strides = [1, 1]} : vector<34x128xf32> to vector<1x128xf32>
    %74 = arith.maximumf %72, %73 : vector<1x128xf32>
    %c15 = arith.constant 15 : index
    %c0_34 = arith.constant 0 : index
    %75 = vector.load %arg9[%c15, %c0_34] : memref<20x128xf32, #tpu.memory_space<vmem>>, vector<1x128xf32>
    tpu.vector_store %arg9[%c15, %c0_34], %74 {strides = array<i32>} : memref<20x128xf32, #tpu.memory_space<vmem>>, vector<1x128xf32>,
    %76 = vector.extract_strided_slice %21 {offsets = [28, 0], sizes = [1, 128], strides = [1, 1]} : vector<34x128xf32> to vector<1x128xf32>
    %77 = vector.extract_strided_slice %21 {offsets = [29, 0], sizes = [1, 128], strides = [1, 1]} : vector<34x128xf32> to vector<1x128xf32>
    %78 = arith.maximumf %76, %77 : vector<1x128xf32>
    %c16 = arith.constant 16 : index
    %c0_35 = arith.constant 0 : index
    %79 = vector.load %arg9[%c16, %c0_35] : memref<20x128xf32, #tpu.memory_space<vmem>>, vector<1x128xf32>
    tpu.vector_store %arg9[%c16, %c0_35], %78 {strides = array<i32>} : memref<20x128xf32, #tpu.memory_space<vmem>>, vector<1x128xf32>,
    %80 = vector.extract_strided_slice %21 {offsets = [30, 0], sizes = [1, 128], strides = [1, 1]} : vector<34x128xf32> to vector<1x128xf32>
    %81 = vector.extract_strided_slice %21 {offsets = [31, 0], sizes = [1, 128], strides = [1, 1]} : vector<34x128xf32> to vector<1x128xf32>
    %82 = arith.maximumf %80, %81 : vector<1x128xf32>
    %c17 = arith.constant 17 : index
    %c0_36 = arith.constant 0 : index
    %83 = vector.load %arg9[%c17, %c0_36] : memref<20x128xf32, #tpu.memory_space<vmem>>, vector<1x128xf32>
    tpu.vector_store %arg9[%c17, %c0_36], %82 {strides = array<i32>} : memref<20x128xf32, #tpu.memory_space<vmem>>, vector<1x128xf32>,
    %84 = vector.extract_strided_slice %21 {offsets = [32, 0], sizes = [1, 128], strides = [1, 1]} : vector<34x128xf32> to vector<1x128xf32>
    %85 = vector.extract_strided_slice %21 {offsets = [33, 0], sizes = [1, 128], strides = [1, 1]} : vector<34x128xf32> to vector<1x128xf32>
    %86 = arith.maximumf %84, %85 : vector<1x128xf32>
    %c18 = arith.constant 18 : index
    %c0_37 = arith.constant 0 : index
    %87 = vector.load %arg9[%c18, %c0_37] : memref<20x128xf32, #tpu.memory_space<vmem>>, vector<1x128xf32>
    tpu.vector_store %arg9[%c18, %c0_37], %86 {strides = array<i32>} : memref<20x128xf32, #tpu.memory_space<vmem>>, vector<1x128xf32>,
    %c0_38 = arith.constant 0 : index
    %c0_39 = arith.constant 0 : index
    %88 = vector.load %arg9[%c0_38, %c0_39] : memref<20x128xf32, #tpu.memory_space<vmem>>, vector<18x128xf32>
    %89 = arith.truncf %88 : vector<18x128xf32> to vector<18x128xbf16>
    %c0_40 = arith.constant 0 : index
    %c0_41 = arith.constant 0 : index
    %c0_42 = arith.constant 0 : index
    %90 = vector.load %arg4[%c0_40, %c0_41, %c0_42] : memref<3x128x256xbf16, #tpu.memory_space<vmem>>, vector<1x128x256xbf16>
    %91 = vector.shape_cast %90 : vector<1x128x256xbf16> to vector<128x256xbf16>
    %cst_43 = arith.constant dense<0.000000e+00> : vector<18x256xf32>
    %92 = tpu.matmul %89, %91, %cst_43 {dimension_numbers = #tpu.dot_dimension_numbers<[1], [0], [0], [1], [0, 0, 1, 1], [], []>} : vector<18x128xbf16>, vector<128x256xbf16>, vector<18x256xf32> -> vector<18x256xf32>
    %c1_44 = arith.constant 1 : index
    %c0_45 = arith.constant 0 : index
    %93 = vector.load %arg9[%c1_44, %c0_45] : memref<20x128xf32, #tpu.memory_space<vmem>>, vector<18x128xf32>
    %94 = arith.truncf %93 : vector<18x128xf32> to vector<18x128xbf16>
    %c1_46 = arith.constant 1 : index
    %c0_47 = arith.constant 0 : index
    %c0_48 = arith.constant 0 : index
    %95 = vector.load %arg4[%c1_46, %c0_47, %c0_48] : memref<3x128x256xbf16, #tpu.memory_space<vmem>>, vector<1x128x256xbf16>
    %96 = vector.shape_cast %95 : vector<1x128x256xbf16> to vector<128x256xbf16>
    %cst_49 = arith.constant dense<0.000000e+00> : vector<18x256xf32>
    %97 = tpu.matmul %94, %96, %cst_49 {dimension_numbers = #tpu.dot_dimension_numbers<[1], [0], [0], [1], [0, 0, 1, 1], [], []>} : vector<18x128xbf16>, vector<128x256xbf16>, vector<18x256xf32> -> vector<18x256xf32>
    %98 = arith.addf %92, %97 : vector<18x256xf32>
    %c2_50 = arith.constant 2 : index
    %c0_51 = arith.constant 0 : index
    %99 = vector.load %arg9[%c2_50, %c0_51] : memref<20x128xf32, #tpu.memory_space<vmem>>, vector<18x128xf32>
    %100 = arith.truncf %99 : vector<18x128xf32> to vector<18x128xbf16>
    %c2_52 = arith.constant 2 : index
    %c0_53 = arith.constant 0 : index
    %c0_54 = arith.constant 0 : index
    %101 = vector.load %arg4[%c2_52, %c0_53, %c0_54] : memref<3x128x256xbf16, #tpu.memory_space<vmem>>, vector<1x128x256xbf16>
    %102 = vector.shape_cast %101 : vector<1x128x256xbf16> to vector<128x256xbf16>
    %cst_55 = arith.constant dense<0.000000e+00> : vector<18x256xf32>
    %103 = tpu.matmul %100, %102, %cst_55 {dimension_numbers = #tpu.dot_dimension_numbers<[1], [0], [0], [1], [0, 0, 1, 1], [], []>} : vector<18x128xbf16>, vector<128x256xbf16>, vector<18x256xf32> -> vector<18x256xf32>
    %104 = arith.addf %98, %103 : vector<18x256xf32>
    %c0_56 = arith.constant 0 : index
    %c0_57 = arith.constant 0 : index
    %105 = vector.load %arg5[%c0_56, %c0_57] : memref<1x256xf32, #tpu.memory_space<vmem>>, vector<1x256xf32>
    %106 = vector.broadcast %105 : vector<1x256xf32> to vector<18x256xf32>
    %107 = arith.addf %104, %106 : vector<18x256xf32>
    %cst_58 = arith.constant 0.000000e+00 : f32
    %108 = vector.broadcast %cst_58 : f32 to vector<18x256xf32>
    %109 = arith.maximumf %107, %108 : vector<18x256xf32>
    %110 = vector.extract_strided_slice %109 {offsets = [0, 0], sizes = [18, 128], strides = [1, 1]} : vector<18x256xf32> to vector<18x128xf32>
    %111 = vector.extract_strided_slice %109 {offsets = [0, 128], sizes = [18, 128], strides = [1, 1]} : vector<18x256xf32> to vector<18x128xf32>
    %112 = arith.maximumf %110, %111 : vector<18x128xf32>
    %113 = vector.extract_strided_slice %112 {offsets = [0, 0], sizes = [1, 128], strides = [1, 1]} : vector<18x128xf32> to vector<1x128xf32>
    %114 = vector.extract_strided_slice %112 {offsets = [1, 0], sizes = [1, 128], strides = [1, 1]} : vector<18x128xf32> to vector<1x128xf32>
    %115 = arith.maximumf %113, %114 : vector<1x128xf32>
    %116 = vector.extract_strided_slice %112 {offsets = [2, 0], sizes = [1, 128], strides = [1, 1]} : vector<18x128xf32> to vector<1x128xf32>
    %117 = vector.extract_strided_slice %112 {offsets = [3, 0], sizes = [1, 128], strides = [1, 1]} : vector<18x128xf32> to vector<1x128xf32>
    %118 = arith.maximumf %116, %117 : vector<1x128xf32>
    %119 = vector.extract_strided_slice %112 {offsets = [4, 0], sizes = [1, 128], strides = [1, 1]} : vector<18x128xf32> to vector<1x128xf32>
    %120 = vector.extract_strided_slice %112 {offsets = [5, 0], sizes = [1, 128], strides = [1, 1]} : vector<18x128xf32> to vector<1x128xf32>
    %121 = arith.maximumf %119, %120 : vector<1x128xf32>
    %122 = vector.extract_strided_slice %112 {offsets = [6, 0], sizes = [1, 128], strides = [1, 1]} : vector<18x128xf32> to vector<1x128xf32>
    %123 = vector.extract_strided_slice %112 {offsets = [7, 0], sizes = [1, 128], strides = [1, 1]} : vector<18x128xf32> to vector<1x128xf32>
    %124 = arith.maximumf %122, %123 : vector<1x128xf32>
    %125 = tpu.concatenate %115, %118, %121, %124 in 1 : vector<1x128xf32>, vector<1x128xf32>, vector<1x128xf32>, vector<1x128xf32> -> vector<1x512xf32>
    %126 = vector.extract_strided_slice %112 {offsets = [10, 0], sizes = [1, 128], strides = [1, 1]} : vector<18x128xf32> to vector<1x128xf32>
    %127 = vector.extract_strided_slice %112 {offsets = [11, 0], sizes = [1, 128], strides = [1, 1]} : vector<18x128xf32> to vector<1x128xf32>
    %128 = arith.maximumf %126, %127 : vector<1x128xf32>
    %129 = vector.extract_strided_slice %112 {offsets = [12, 0], sizes = [1, 128], strides = [1, 1]} : vector<18x128xf32> to vector<1x128xf32>
    %130 = vector.extract_strided_slice %112 {offsets = [13, 0], sizes = [1, 128], strides = [1, 1]} : vector<18x128xf32> to vector<1x128xf32>
    %131 = arith.maximumf %129, %130 : vector<1x128xf32>
    %132 = vector.extract_strided_slice %112 {offsets = [14, 0], sizes = [1, 128], strides = [1, 1]} : vector<18x128xf32> to vector<1x128xf32>
    %133 = vector.extract_strided_slice %112 {offsets = [15, 0], sizes = [1, 128], strides = [1, 1]} : vector<18x128xf32> to vector<1x128xf32>
    %134 = arith.maximumf %132, %133 : vector<1x128xf32>
    %135 = vector.extract_strided_slice %112 {offsets = [16, 0], sizes = [1, 128], strides = [1, 1]} : vector<18x128xf32> to vector<1x128xf32>
    %136 = vector.extract_strided_slice %112 {offsets = [17, 0], sizes = [1, 128], strides = [1, 1]} : vector<18x128xf32> to vector<1x128xf32>
    %137 = arith.maximumf %135, %136 : vector<1x128xf32>
    %138 = tpu.concatenate %128, %131, %134, %137 in 1 : vector<1x128xf32>, vector<1x128xf32>, vector<1x128xf32>, vector<1x128xf32> -> vector<1x512xf32>
    %139 = tpu.concatenate %125, %138 in 0 : vector<1x512xf32>, vector<1x512xf32> -> vector<2x512xf32>
    %140 = arith.truncf %139 : vector<2x512xf32> to vector<2x512xbf16>
    %c0_59 = arith.constant 0 : index
    %c0_60 = arith.constant 0 : index
    %141 = vector.load %arg6[%c0_59, %c0_60] : memref<512x10xbf16, #tpu.memory_space<vmem>>, vector<512x10xbf16>
    %cst_61 = arith.constant dense<0.000000e+00> : vector<2x10xf32>
    %142 = tpu.matmul %140, %141, %cst_61 {dimension_numbers = #tpu.dot_dimension_numbers<[1], [0], [0], [1], [0, 0, 1, 1], [], []>} : vector<2x512xbf16>, vector<512x10xbf16>, vector<2x10xf32> -> vector<2x10xf32>
    %c0_62 = arith.constant 0 : index
    %c0_63 = arith.constant 0 : index
    %143 = vector.load %arg7[%c0_62, %c0_63] : memref<1x10xf32, #tpu.memory_space<vmem>>, vector<1x10xf32>
    %144 = vector.broadcast %143 : vector<1x10xf32> to vector<2x10xf32>
    %145 = arith.addf %142, %144 : vector<2x10xf32>
    %c0_64 = arith.constant 0 : index
    %c0_65 = arith.constant 0 : index
    %146 = vector.load %arg8[%c0_64, %c0_65] : memref<2x10xf32, #tpu.memory_space<vmem>>, vector<2x10xf32>
    tpu.vector_store %arg8[%c0_64, %c0_65], %145 {strides = array<i32>} : memref<2x10xf32, #tpu.memory_space<vmem>>, vector<2x10xf32>,
    return
  }
  func.func @transform_0(%arg0: i32) -> (i32, i32) {
    %c0_i32 = arith.constant 0 : i32
    %c0_i32_0 = arith.constant 0 : i32
    %c0_i32_1 = arith.constant 0 : i32
    return %c0_i32, %c0_i32_0 : i32, i32
  }
  func.func @transform_1(%arg0: i32) -> (i32, i32, i32) {
    %c0_i32 = arith.constant 0 : i32
    %c0_i32_0 = arith.constant 0 : i32
    %c0_i32_1 = arith.constant 0 : i32
    %c0_i32_2 = arith.constant 0 : i32
    return %c0_i32, %c0_i32_0, %c0_i32_1 : i32, i32, i32
  }
  func.func @transform_2(%arg0: i32) -> (i32, i32) {
    %c0_i32 = arith.constant 0 : i32
    %c0_i32_0 = arith.constant 0 : i32
    %c0_i32_1 = arith.constant 0 : i32
    return %c0_i32, %c0_i32_0 : i32, i32
  }
  func.func @transform_3(%arg0: i32) -> (i32, i32, i32) {
    %c0_i32 = arith.constant 0 : i32
    %c0_i32_0 = arith.constant 0 : i32
    %c0_i32_1 = arith.constant 0 : i32
    %c0_i32_2 = arith.constant 0 : i32
    return %c0_i32, %c0_i32_0, %c0_i32_1 : i32, i32, i32
  }
  func.func @transform_4(%arg0: i32) -> (i32, i32) {
    %c0_i32 = arith.constant 0 : i32
    %c0_i32_0 = arith.constant 0 : i32
    %c0_i32_1 = arith.constant 0 : i32
    return %c0_i32, %c0_i32_0 : i32, i32
  }
  func.func @transform_5(%arg0: i32) -> (i32, i32) {
    %c0_i32 = arith.constant 0 : i32
    %c0_i32_0 = arith.constant 0 : i32
    %c0_i32_1 = arith.constant 0 : i32
    return %c0_i32, %c0_i32_0 : i32, i32
  }
  func.func @transform_6(%arg0: i32) -> (i32, i32) {
    %c0_i32 = arith.constant 0 : i32
    %c0_i32_0 = arith.constant 0 : i32
    %c0_i32_1 = arith.constant 0 : i32
    return %c0_i32, %c0_i32_0 : i32, i32
  }
  func.func @transform_7(%arg0: i32) -> (i32, i32) {
    %c0_i32 = arith.constant 0 : i32
    %c0_i32_0 = arith.constant 0 : i32
    %c0_i32_1 = arith.constant 0 : i32
    return %c0_i32, %c0_i32_0 : i32, i32
  }
}

</mosaic_0001>

<bundles_post_ra>
// kernel: forward.1
= control target key start
LH: loop header
LB: loop body
LE: loop exit
PB: predicated region body
PF: predicated region fallthrough
CT: control target
= control target key end

     0   :  { %v1826_v2 = vmov 0   ;;  %vm128_vm0 = vcmask 523264   ;;  %vm64_vm1 = vsmask.f32 7424  ;;  %vm323_vm2 = vcmask 1046528   ;;  %s2262_s0 = inlined_call_operand.vmem [shape: bf16[36,64], index: 0, kind: input, shape index: {}]   ;;  %s2263_s1 = inlined_call_operand.vmem [shape: bf16[3,64,256], index: 1, kind: input, shape index: {}]   ;;  %s2264_s2 = inlined_call_operand.vmem [shape: f32[1,256], index: 2, kind: input, shape index: {}]   ;;  %s2265_s3 = inlined_call_operand.vmem [shape: bf16[3,128,256], index: 3, kind: input, shape index: {}]   ;;  %s2266_s4 = inlined_call_operand.vmem [shape: f32[1,256], index: 4, kind: input, shape index: {}]   ;;  %s2267_s5 = inlined_call_operand.vmem [shape: bf16[512,10], index: 5, kind: input, shape index: {}]   ;;  %s2268_s6 = inlined_call_operand.vmem [shape: f32[1,10], index: 6, kind: input, shape index: {}]   ;;  %s2269_s7 = inlined_call_operand.hbm [shape: f32[2,10], index: 7, kind: output, shape index: {}]  }
   0x1   :  { %v1657_v0 = vld [vmem:[%s2263_s1 + $0x44] ss:$8 sps:$4 sm:$0xff]   ;;  %170 = vmatprep.mubr.bf16.mxu1 %v1826_v2  ;;  %281 = vmatprep.mubr.bf16.mxu0 %v1826_v2  ;;  %v1661_v3 = vld [vmem:[%s2263_s1 + $0x40] ss:$8 sps:$4 sm:$0xff]   ;;  %v1663_v5 = vld [vmem:[%s2263_s1 + $0x54] ss:$8 sps:$4 sm:$0xff]  }
   0x2   :  { %v1659_v1 = vld [vmem:[%s2263_s1 + $0x4] ss:$8 sps:$4 sm:$0xff]   ;;  %138 = vmatprep.subr.bf16.mxu1 %v1657_v0  ;;  %v1662_v4 = vld [vmem:[%s2263_s1] ss:$8 sps:$4 sm:$0xff]   ;;  %v1665_v6 = vld [vmem:[%s2263_s1 + $0x14] ss:$8 sps:$4 sm:$0xff]  }
   0x3   :  { %249 = vmatprep.subr.bf16.mxu0 %v1659_v1  ;;  %139 = vmatpush1.bf16.msra.mxu1 %v1661_v3  ;;  %v1667_v7 = vld [vmem:[%s2263_s1 + $0x50] ss:$8 sps:$4 sm:$0xff]   ;;  %v1669_v9 = vld [vmem:[%s2263_s1 + $0x64] ss:$8 sps:$4 sm:$0xff]   ;;  %v1673_v11 = vld [vmem:[%s2263_s1 + $0x60] ss:$8 sps:$4 sm:$0xff]  }
   0x4   :  { %250 = vmatpush1.bf16.msra.mxu0 %v1662_v4  ;;  %140 = vmatprep.subr.bf16.mxu1 %v1663_v5  ;;  %v1668_v8 = vld [vmem:[%s2263_s1 + $0x10] ss:$8 sps:$4 sm:$0xff]   ;;  %v1671_v10 = vld [vmem:[%s2263_s1 + $0x24] ss:$8 sps:$4 sm:$0xff]   ;;  %v1674_v12 = vld [vmem:[%s2263_s1 + $0x20] ss:$8 sps:$4 sm:$0xff]  }
   0x5   :  { %251 = vmatprep.subr.bf16.mxu0 %v1665_v6  ;;  %v1675_v13 = vld [vmem:[%s2263_s1 + $0x74] ss:$8 sps:$4 sm:$0xff]   ;;  %v1679_v15 = vld [vmem:[%s2263_s1 + $0x70] ss:$8 sps:$4 sm:$0xff]   ;;  %v28_v17 = vld [vmem:[%s2262_s0] sm:$0xf] }
   0x6   :  { %v1677_v14 = vld [vmem:[%s2263_s1 + $0x34] ss:$8 sps:$4 sm:$0xff]   ;;  %v1680_v16 = vld [vmem:[%s2263_s1 + $0x30] ss:$8 sps:$4 sm:$0xff]   ;;  %v29_v18 = vld [vmem:[%s2262_s0 + $0x4] sm:$0xf] }
   0x7   :  { %141 = vmatpush1.bf16.msra.mxu1 %v1667_v7  ;;  %v1424_v19 = vcombine.low %v28_v17, %v29_v18  ;;  %v1682_v20 = vld [vmem:[%s2262_s0 + $0x8] sm:$0xff]   ;;  %v1689_v28 = vld [vmem:[%s2262_s0 + $0x10] ss:$0 sps:$4 sm:$0x33]   ;;  %v1688_v29 = vld [vmem:[%s2263_s1 + $0x94] ss:$8 sps:$4 sm:$0xff]  }
   0x8   :  { %252 = vmatpush1.bf16.msra.mxu0 %v1668_v8  ;;  %142 = vmatprep.subr.bf16.mxu1 %v1669_v9  ;;  %v1685_v21 = vld [vmem:[%s2263_s1 + $0x84] ss:$8 sps:$4 sm:$0xff]   ;;  %v73_v24 = vshll.u32 %v1682_v20, 16  ;;  %v1683_v25 = vld [vmem:[%s2263_s1 + $0x80] ss:$8 sps:$4 sm:$0xff]   ;;  %v77_v31 = vshrl.u32 %v1682_v20, 16 }
   0x9   :  { %253 = vmatprep.subr.bf16.mxu0 %v1671_v10  ;;  %v66_v22 = vshrl.u32 %v1424_v19, 16  ;;  %v68_v23 = vshll.u32 %v1424_v19, 16  ;;  %v81_v32 = vshll.u32 %v1689_v28, 16  ;;  %v1686_v33 = vld [vmem:[%s2263_s1 + $0x90] ss:$8 sps:$4 sm:$0xff]   ;;  %v85_v43 = vshrl.u32 %v1689_v28, 16 }
   0xa   :  { %v75_v27 = vrot.slane %v73_v24, 1  ;;  %v1692_v35 = vld [vmem:[%s2263_s1 + $0xa4] ss:$8 sps:$4 sm:$0xff]   ;;  %v1690_v38 = vld [vmem:[%s2263_s1 + $0xa0] ss:$8 sps:$4 sm:$0xff]   ;;  %v325_v47 = vrot.slane %v1682_v20, 1 }
   0xb   :  { %143 = vmatpush1.bf16.msra.mxu1 %v1673_v11  ;;  %v70_v26 = vrot.slane %v68_v23, 1  ;;  %v83_v37 = vrot.slane %v81_v32, 1  ;;  %v1696_v39 = vld [vmem:[%s2263_s1 + $0xb4] ss:$8 sps:$4 sm:$0xff]   ;;  %v1694_v41 = vld [vmem:[%s2263_s1 + $0xb0] ss:$8 sps:$4 sm:$0xff]  }
   0xc   :  { %254 = vmatpush1.bf16.msra.mxu0 %v1674_v12  ;;  %144 = vmatprep.subr.bf16.mxu1 %v1675_v13  ;;  %v79_v36 = vor.u32 %v77_v31, %v75_v27  ;;  %v310_v42 = vld [vmem:[%s2262_s0] sm:$0xe]  ;;  %v1693_v44 = vld [vmem:[%s2262_s0 + $0x10] ss:$0 sps:$4 sm:$0x11]   ;;  %v327_v48 = vrot.slane %v1689_v28, 1 }
   0xd   :  { %255 = vmatprep.subr.bf16.mxu0 %v1677_v14  ;;  %v71_v30 = vor.u32 %v70_v26, %v66_v22  ;;  %v1458_v45 = vcombine.low %v310_v42, %v29_v18  ;;  %v87_v46 = vor.u32 %v85_v43, %v83_v37 }
   0xe   :  { %v84_v40 = vsel %vm64_vm1, %v79_v36, %v83_v37  ;;  %v328_v51 = vsel %vm323_vm2, %v325_v47, %v327_v48 }
   0xf   :  { %145 = vmatpush1.bf16.msra.mxu1 %v1679_v15  ;;  %v76_v34 = vsel %vm64_vm1, %v71_v30, %v75_v27  ;;  %v324_v49 = vrot.slane %v1458_v45, 1 }
  0x10   :  { %256 = vmatpush1.bf16.msra.mxu0 %v1680_v16 }
  0x11   :  { %378 = vmatprep.subr.bf16.mxu0 %v1685_v21  ;;  %v326_v50 = vsel %vm323_vm2, %v324_v49, %v325_v47 }
  0x12   :  { %1435 = vmatmul.mubr.msk.bf16.vlgmr.msra.gmra.mrb[0].mxu1 %vm128_vm0, %v76_v34 }
  0x13   :  { %1447 = vmatmul.mubr.msk.bf16.vlgmr.msra.gmra.mrb[0].mxu0 %vm128_vm0, %v1424_v19  ;;  %180 = vmatprep.mubr.bf16.mxu1 %v1826_v2 }
  0x14   :  { %379 = vmatpush1.bf16.msra.mxu0 %v1683_v25  ;;  %291 = vmatprep.mubr.bf16.mxu0 %v1826_v2 }
  0x15   :  { %380 = vmatprep.subr.bf16.mxu0 %v1688_v29 }
  0x18   :  { %381 = vmatpush1.bf16.msra.mxu0 %v1686_v33 }
  0x19   :  { %382 = vmatprep.subr.bf16.mxu0 %v1692_v35 }
  0x1a   :  { %1436 = vmatmul.mubr.msk.bf16.gmra.mrb[4].mxu1 %vm128_vm0, %v84_v40 }
  0x1b   :  { %1448 = vmatmul.mubr.msk.bf16.gmra.mrb[4].mxu0 %vm128_vm0, %v1682_v20  ;;  %190 = vmatprep.mubr.bf16.mxu1 %v1826_v2 }
  0x1c   :  { %383 = vmatpush1.bf16.msra.mxu0 %v1690_v38  ;;  %301 = vmatprep.mubr.bf16.mxu0 %v1826_v2 }
  0x1d   :  { %384 = vmatprep.subr.bf16.mxu0 %v1696_v39 }
  0x20   :  { %385 = vmatpush1.bf16.msra.mxu0 %v1694_v41 }
  0x22   :  { %1437 = vmatmul.mubr.msk.bf16.gmra.mrb[8].mxu1 %vm128_vm0, %v87_v46 }
  0x23   :  { %1449 = vmatmul.mubr.msk.bf16.gmra.mrb[8].mxu0 %vm128_vm0, %v1693_v44  ;;  %680 = vmatprep.mubr.bf16.mxu1 %v1826_v2 }
  0x24   :  { %410 = vmatprep.mubr.bf16.mxu0 %v1826_v2 }
  0x2b   :  { %1467 = vmatmul.mubr.msk.bf16.vlgmr.msra.gmra.mrb[0].mxu0 %vm128_vm0, %v326_v50 }
  0x2c   :  { %420 = vmatprep.mubr.bf16.mxu0 %v1826_v2 }
  0x33   :  { %1468 = vmatmul.mubr.msk.bf16.gmra.mrb[4].mxu0 %vm128_vm0, %v328_v51 }
  0x34   :  { %430 = vmatprep.mubr.bf16.mxu0 %v1826_v2 }
  0x35   :  { %12 = vsyncpa [#allocation4], 0  ;;  %v1700_v52 = vld [vmem:[%s2265_s3 + $0x84] ss:$8 sps:$4 sm:$0xff]   ;;  %v1698_v53 = vld [vmem:[%s2265_s3 + $0x80] ss:$8 sps:$4 sm:$0xff]   ;;  %v451_v13 = vlaneseq }
  0x36   :  { %648 = vmatprep.subr.bf16.mxu1 %v1700_v52  ;;  %v1703_v54 = vld [vmem:[%s2265_s3 + $0x94] ss:$8 sps:$4 sm:$0xff]   ;;  %v1701_v55 = vld [vmem:[%s2265_s3 + $0x90] ss:$8 sps:$4 sm:$0xff]   ;;  %v1827_v56 = vmov 0.0   ;;  %vm1048_vm3 = vcmask 1040384  }
  0x37   :  { %649 = vmatpush1.bf16.msra.mxu1 %v1698_v53  ;;  %486 = vst [vmem:[#allocation2] sm:$0xff] %v1827_v56  ;;  %487 = vst [vmem:[#allocation2 + $0x8] sm:$0xff] %v1827_v56  ;;  %v1706_v57 = vld [vmem:[%s2265_s3 + $0xa4] ss:$8 sps:$4 sm:$0xff]   ;;  %v1704_v58 = vld [vmem:[%s2265_s3 + $0xa0] ss:$8 sps:$4 sm:$0xff]  }
  0x38   :  { %650 = vmatprep.subr.bf16.mxu1 %v1703_v54  ;;  %488 = vst [vmem:[#allocation2 + $0x10] sm:$0xf] %v1827_v56  ;;  %v1709_v59 = vld [vmem:[%s2265_s3 + $0xb4] ss:$8 sps:$4 sm:$0xff]   ;;  %v1707_v60 = vld [vmem:[%s2265_s3 + $0xb0] ss:$8 sps:$4 sm:$0xff]  }
  0x39   :  { %v1712_v61 = vld [vmem:[%s2265_s3 + $0xc4] ss:$8 sps:$4 sm:$0xff]   ;;  %v1710_v62 = vld [vmem:[%s2265_s3 + $0xc0] ss:$8 sps:$4 sm:$0xff]   ;;  %v1715_v63 = vld [vmem:[%s2265_s3 + $0xd4] ss:$8 sps:$4 sm:$0xff]  }
  0x3a   :  { %v1713_v0 = vld [vmem:[%s2265_s3 + $0xd0] ss:$8 sps:$4 sm:$0xff]   ;;  %v1718_v1 = vld [vmem:[%s2265_s3 + $0xe4] ss:$8 sps:$4 sm:$0xff]   ;;  %v1716_v3 = vld [vmem:[%s2265_s3 + $0xe0] ss:$8 sps:$4 sm:$0xff]  }
  0x3b   :  { %1469 = vmatmul.mubr.msk.bf16.gmra.mrb[12].mxu0 %vm128_vm0, %v327_v48  ;;  %651 = vmatpush1.bf16.msra.mxu1 %v1701_v55  ;;  %v1721_v4 = vld [vmem:[%s2265_s3 + $0xf4] ss:$8 sps:$4 sm:$0xff]   ;;  %v1719_v5 = vld [vmem:[%s2265_s3 + $0xf0] ss:$8 sps:$4 sm:$0xff]   ;;  %v1724_v6 = vld [vmem:[%s2265_s3 + $0x4] ss:$8 sps:$4 sm:$0xff]  }
  0x3c   :  { %652 = vmatprep.subr.bf16.mxu1 %v1706_v57  ;;  %v2031_v16 = vshrl.u32 %v451_v13, 7  ;;  %v449_v26 = vld [vmem:[%s2264_s2] sm:$0x3]  ;;  %s1828_s19 = smov [#allocation3]   ;;  %vm1400_vm4 = vcmask 74752  }
  0x3d   :  { %s1408_s20 = sshll.u32 %s1828_s19, 4  ;;  %s1409_s20 = int_to_ptr.vmem [resolvable:$true] %s1408_s20 }
  0x3e   :  { %v453_v24 = vsub.s32 0, %v2031_v16  ;;  %v457_v27 = vsub.s32 1, %v2031_v16  ;;  %p1807_p1 = scmp.lt.s32.totalorder %s1409_s20, %s1409_s20 }
  0x3f   :  { %653 = vmatpush1.bf16.msra.mxu1 %v1704_v58 }
  0x40   :  { %654 = vmatprep.subr.bf16.mxu1 %v1709_v59  ;;  %v454_v30 = vrot.slane %v449_v26, %v453_v24  ;;  %v458_v32 = vrot.slane %v449_v26, %v457_v27 }
  0x43   :  { %655 = vmatpush1.bf16.msra.mxu1 %v1707_v60 }
  0x44   :  { %656 = vmatprep.subr.bf16.mxu1 %v1712_v61 }
  0x47   :  { %657 = vmatpush1.bf16.msra.mxu1 %v1710_v62 }
  0x48   :  { %658 = vmatprep.subr.bf16.mxu1 %v1715_v63 }
  0x4b   :  { %659 = vmatpush1.bf16.msra.mxu1 %v1713_v0 }
  0x4c   :  { %660 = vmatprep.subr.bf16.mxu1 %v1718_v1 }
  0x4f   :  { %661 = vmatpush1.bf16.msra.mxu1 %v1716_v3 }
  0x50   :  { %662 = vmatprep.subr.bf16.mxu1 %v1721_v4 }
  0x53   :  { %663 = vmatpush1.bf16.msra.mxu1 %v1719_v5 }
  0x54   :  { %779 = vmatprep.subr.bf16.mxu1 %v1724_v6 }
  0xe5   :  { %v172_v7 = vpop.f32.mrb[0].mxu1 }
  0xe6   :  { %v174_v8 = vpop.f32.mrb[1].mxu1 }
  0xe7   :  { %v176_v9 = vpop.f32.mrb[2].mxu1 }
  0xe8   :  { %v178_v10 = vpop.f32.mrb[3].mxu1 }
  0xed   :  { %v182_v11 = vpop.f32.mrb[4].mxu1 }
  0xee   :  { %v184_v12 = vpop.f32.mrb[5].mxu1 }
  0xef   :  { %v186_v14 = vpop.f32.mrb[6].mxu1 }
  0xf0   :  { %v188_v15 = vpop.f32.mrb[7].mxu1 }
  0xf5   :  { %v192_v19 = vpop.f32.mrb[8].mxu1 }
  0xf6   :  { %v303_v17 = vpop.f32.mrb[8].mxu0  ;;  %v194_v22 = vpop.f32.mrb[9].mxu1 }
  0xf7   :  { %v305_v18 = vpop.f32.mrb[9].mxu0  ;;  %v304_v21 = vadd.f32 %v303_v17, %v192_v19  ;;  %v196_v28 = vpop.f32.mrb[10].mxu1 }
  0xf8   :  { %v307_v20 = vpop.f32.mrb[10].mxu0  ;;  %v306_v25 = vadd.f32 %v305_v18, %v194_v22  ;;  %v197_v29 = vpop.f32.mrb[11].mxu1 }
  0xf9   :  { %v308_v23 = vpop.f32.mrb[11].mxu0 }
  0xfe   :  { %v412_v31 = vpop.f32.mrb[0].mxu0 }
  0xff   :  { %v1630_v33 = vadd.f32 %v412_v31, %v172_v7  ;;  %v414_v34 = vpop.f32.mrb[1].mxu0 }
 0x100   :  { %v1631_v35 = vadd.f32 %v414_v34, %v174_v8  ;;  %v416_v36 = vpop.f32.mrb[2].mxu0  ;;  %v1725_v34 = vld [vmem:[%s2265_s3 + $0x10] ss:$8 sps:$4 sm:$0xff]  }
 0x101   :  { %v461_v37 = vadd.f32 %v1630_v33, %v454_v30  ;;  %v1632_v38 = vadd.f32 %v416_v36, %v176_v9  ;;  %v418_v39 = vpop.f32.mrb[3].mxu0  ;;  %v1727_v33 = vld [vmem:[%s2265_s3 + $0x14] ss:$8 sps:$4 sm:$0xff]  }
 0x102   :  { %v462_v40 = vadd.f32 %v1631_v35, %v458_v32  ;;  %v1633_v41 = vadd.f32 %v418_v39, %v178_v10  ;;  %v1730_v35 = vld [vmem:[%s2265_s3 + $0x24] ss:$8 sps:$4 sm:$0xff]   ;;  %v1733_v39 = vld [vmem:[%s2265_s3 + $0x34] ss:$8 sps:$4 sm:$0xff]  }
 0x103   :  { %v471_v42 = vmax.f32 %v461_v37, 0.0  ;;  %v463_v43 = vadd.f32 %v1632_v38, %v454_v30  ;;  %v1728_v37 = vld [vmem:[%s2265_s3 + $0x20] ss:$8 sps:$4 sm:$0xff]  }
 0x104   :  { %v472_v44 = vmax.f32 %v462_v40, 0.0  ;;  %v464_v45 = vadd.f32 %v1633_v41, %v458_v32  ;;  %v1731_v40 = vld [vmem:[%s2265_s3 + $0x30] ss:$8 sps:$4 sm:$0xff]   ;;  %v1736_v41 = vld [vmem:[%s2265_s3 + $0x44] ss:$8 sps:$4 sm:$0xff]  }
 0x105   :  { %v473_v46 = vmax.f32 %v463_v43, 0.0  ;;  %v1739_v43 = vld [vmem:[%s2265_s3 + $0x54] ss:$8 sps:$4 sm:$0xff]  }
 0x106   :  { %v481_v47 = vmax.f32 %v471_v42, %v472_v44  ;;  %v474_v48 = vmax.f32 %v464_v45, 0.0  ;;  %v422_v49 = vpop.f32.mrb[4].mxu0  ;;  %v1734_v42 = vld [vmem:[%s2265_s3 + $0x40] ss:$8 sps:$4 sm:$0xff]   ;;  %v1737_v44 = vld [vmem:[%s2265_s3 + $0x50] ss:$8 sps:$4 sm:$0xff]  }
 0x107   :  { %v1634_v50 = vadd.f32 %v422_v49, %v182_v11  ;;  %v424_v51 = vpop.f32.mrb[5].mxu0  ;;  %v1742_v45 = vld [vmem:[%s2265_s3 + $0x64] ss:$8 sps:$4 sm:$0xff]  }
 0x108   :  { %v490_v52 = vrot.slane %v481_v47, 1  ;;  %v482_v53 = vmax.f32 %v473_v46, %v474_v48  ;;  %v1635_v54 = vadd.f32 %v424_v51, %v184_v12  ;;  %v426_v55 = vpop.f32.mrb[6].mxu0  ;;  %v1740_v46 = vld [vmem:[%s2265_s3 + $0x60] ss:$8 sps:$4 sm:$0xff]   ;;  %v1743_v48 = vld [vmem:[%s2265_s3 + $0x70] ss:$8 sps:$4 sm:$0xff]  }
 0x109   :  { %v465_v56 = vadd.f32 %v1634_v50, %v454_v30  ;;  %v1636_v57 = vadd.f32 %v426_v55, %v186_v14  ;;  %v428_v58 = vpop.f32.mrb[7].mxu0  ;;  %v1748_v49 = vld [vmem:[%s2265_s3 + $0x104] ss:$8 sps:$4 sm:$0xff]   ;;  %v1749_v55 = vld [vmem:[%s2265_s3 + $0x110] ss:$8 sps:$4 sm:$0xff]  }
 0x10a   :  { %v492_v59 = vmax.f32 %v481_v47, %v490_v52  ;;  %v498_v60 = vrot.slane %v482_v53, 1  ;;  %v466_v61 = vadd.f32 %v1635_v54, %v458_v32  ;;  %v1637_v62 = vadd.f32 %v428_v58, %v188_v15  ;;  %v1745_v47 = vld [vmem:[%s2265_s3 + $0x74] ss:$8 sps:$4 sm:$0xff]   ;;  %v1746_v52 = vld [vmem:[%s2265_s3 + $0x100] ss:$8 sps:$4 sm:$0xff]  }
 0x10b   :  { %v475_v63 = vmax.f32 %v465_v56, 0.0  ;;  %v467_v0 = vadd.f32 %v1636_v57, %v454_v30  ;;  %v1751_v54 = vld [vmem:[%s2265_s3 + $0x114] ss:$8 sps:$4 sm:$0xff]   ;;  %v1754_v56 = vld [vmem:[%s2265_s3 + $0x124] ss:$8 sps:$4 sm:$0xff]  }
 0x10c   :  { %493 = vst [vmem:[#allocation2 + $0x1] sm:$0x1] %v492_v59  ;;  %494 = vst [vmem:[#allocation2] sm:$0x4] %v492_v59  ;;  %v500_v1 = vmax.f32 %v482_v53, %v498_v60  ;;  %v476_v3 = vmax.f32 %v466_v61, 0.0  ;;  %v468_v4 = vadd.f32 %v1637_v62, %v458_v32 }
 0x10d   :  { %495 = vst [vmem:[#allocation2 - $0x1] sm:$0x10] %v492_v59  ;;  %496 = vst [vmem:[#allocation2 - $0x2] sm:$0x40] %v492_v59  ;;  %v477_v5 = vmax.f32 %v467_v0, 0.0 }
 0x10e   :  { %501 = vst [vmem:[#allocation2 + $0x5] sm:$0x1] %v500_v1  ;;  %502 = vst [vmem:[#allocation2 + $0x4] sm:$0x4] %v500_v1  ;;  %v483_v6 = vmax.f32 %v475_v63, %v476_v3  ;;  %v478_v7 = vmax.f32 %v468_v4, 0.0  ;;  %v432_v8 = vpop.f32.mrb[12].mxu0 }
 0x10f   :  { %503 = vst [vmem:[#allocation2 + $0x3] sm:$0x10] %v500_v1  ;;  %504 = vst [vmem:[#allocation2 + $0x2] sm:$0x40] %v500_v1  ;;  %v447_v9 = vadd.f32 %v432_v8, %v304_v21  ;;  %v434_v10 = vpop.f32.mrb[13].mxu0 }
 0x110   :  { %v506_v11 = vrot.slane %v483_v6, 1  ;;  %v484_v12 = vmax.f32 %v477_v5, %v478_v7  ;;  %v448_v13 = vadd.f32 %v434_v10, %v306_v25  ;;  %v436_v14 = vpop.f32.mrb[14].mxu0  ;;  %v1722_v25 = vld [vmem:[%s2265_s3] ss:$8 sps:$4 sm:$0xff]   ;;  %v1757_v60 = vld [vmem:[%s2265_s3 + $0x134] ss:$8 sps:$4 sm:$0xff]  }
 0x111   :  { %v469_v15 = vadd.f32 %v454_v30, %v447_v9  ;;  %v437_v17 = vpop.f32.mrb[15].mxu0  ;;  %v1752_v58 = vld [vmem:[%s2265_s3 + $0x120] ss:$8 sps:$4 sm:$0xff]   ;;  %v1755_v61 = vld [vmem:[%s2265_s3 + $0x130] ss:$8 sps:$4 sm:$0xff]  }
 0x112   :  { %v508_v18 = vmax.f32 %v483_v6, %v506_v11  ;;  %v513_v19 = vrot.slane %v484_v12, 1  ;;  %v470_v20 = vadd.f32 %v458_v32, %v448_v13  ;;  %v1760_v62 = vld [vmem:[%s2265_s3 + $0x144] ss:$8 sps:$4 sm:$0xff]   ;;  %v1758_v63 = vld [vmem:[%s2265_s3 + $0x140] ss:$8 sps:$4 sm:$0xff]   ;;  %v1775_v17 = vld [vmem:[%s2267_s5 + $0x10] sm:$0xff]  }
 0x113   :  { %v479_v22 = vmax.f32 %v469_v15, 0.0  ;;  %v1763_v0 = vld [vmem:[%s2265_s3 + $0x154] ss:$8 sps:$4 sm:$0xff]   ;;  %v1761_v1 = vld [vmem:[%s2265_s3 + $0x150] ss:$8 sps:$4 sm:$0xff]   ;;  %v1771_v13 = vld [vmem:[%s2267_s5] sm:$0xff]  }
 0x114   :  { %509 = vst [vmem:[#allocation2 + $0x9] sm:$0x4] %v508_v18  ;;  %510 = vst [vmem:[#allocation2 + $0x8] sm:$0x10] %v508_v18  ;;  %v515_v23 = vmax.f32 %v484_v12, %v513_v19  ;;  %v480_v26 = vmax.f32 %v470_v20, 0.0  ;;  %v1770_v12 = vld [vmem:[%s2267_s5 + $0x40] sm:$0xff]  }
 0x115   :  { %511 = vst [vmem:[#allocation2 + $0x7] sm:$0x40] %v508_v18  ;;  %v1766_v3 = vld [vmem:[%s2265_s3 + $0x164] ss:$8 sps:$4 sm:$0xff]   ;;  %v1764_v4 = vld [vmem:[%s2265_s3 + $0x160] ss:$8 sps:$4 sm:$0xff]   ;;  %1586 = vmatprep.subr.bf16.mxu0 %v1770_v12 }
 0x116   :  { %516 = vst [vmem:[#allocation2 + $0xe] sm:$0x1] %v515_v23  ;;  %517 = vst [vmem:[#allocation2 + $0xd] sm:$0x4] %v515_v23  ;;  %v485_v21 = vmax.f32 %v479_v22, %v480_v26  ;;  %v546_v30 = vld [vmem:[#allocation2 + $0x1] sm:$0xff]  ;;  %1587 = vmatpush3.bf16.msra.mxu0 %v1771_v13  ;;  %v1774_v15 = vld [vmem:[%s2267_s5 + $0x50] sm:$0xff]  }
 0x117   :  { %518 = vst [vmem:[#allocation2 + $0xc] sm:$0x10] %v515_v23  ;;  %519 = vst [vmem:[#allocation2 + $0xb] sm:$0x40] %v515_v23  ;;  %v525_v51 = vld [vmem:[#allocation2] sm:$0xff]  ;;  %v1772_v14 = vld [vmem:[%s2267_s5 + $0x48] sm:$0xff]  }
 0x118   :  { %v521_v28 = vrot.slane %v485_v21, 1  ;;  %v1769_v5 = vld [vmem:[%s2265_s3 + $0x174] ss:$8 sps:$4 sm:$0xff]   ;;  %v1767_v6 = vld [vmem:[%s2265_s3 + $0x170] ss:$8 sps:$4 sm:$0xff]   ;;  %v830_v8 = vld [vmem:[#allocation2 + $0x2] sm:$0xff]  ;;  %1588 = vmatprep.subr.bf16.mxu0 %v1772_v14 }
 0x119   :  { %v1776_v18 = vld [vmem:[%s2267_s5 + $0x58] sm:$0xff]   ;;  %v1778_v20 = vld [vmem:[%s2267_s5 + $0x60] sm:$0xff]   ;;  %v1780_v23 = vld [vmem:[%s2267_s5 + $0x68] sm:$0xff]  }
 0x11a   :  { %v523_v29 = vmax.f32 %v485_v21, %v521_v28  ;;  %v1777_v19 = vld [vmem:[%s2267_s5 + $0x18] sm:$0xff]   ;;  %v1779_v22 = vld [vmem:[%s2267_s5 + $0x20] sm:$0xff]   ;;  %v1781_v26 = vld [vmem:[%s2267_s5 + $0x28] sm:$0xff]  }
 0x11b   :  { %v1782_v21 = vld [vmem:[%s2267_s5 + $0x70] sm:$0xff]  }
 0x11c   :  { %524 = vst [vmem:[#allocation2 + $0x12] sm:$0x1] %v523_v29  ;;  %v1783_v28 = vld [vmem:[%s2267_s5 + $0x30] sm:$0xff]   ;;  %v1784_v29 = vld [vmem:[%s2267_s5 + $0x78] sm:$0xff]  }
 0x11d   :  { %v526_v50 = vld [vmem:[#allocation2 + $0x8] sm:$0xff] }
 0x11e   :  { %v547_v31 = vld [vmem:[#allocation2 + $0x9] sm:$0xff]  ;;  %v528_v53 = vpack.c.bf16 %v526_v50, %v525_v51 }
 0x11f   :  { %v549_v32 = vpack.c.bf16 %v547_v31, %v546_v30  ;;  %v527_v57 = vld [vmem:[#allocation2 + $0x10] sm:$0x3]  ;;  %v1786_v30 = vld [vmem:[%s2267_s5 + $0xc0] sm:$0xff]  }
 0x120   :  { %v529_v59 = vpack.c.bf16 %v527_v57, %v527_v57  ;;  %v831_v7 = vld [vmem:[#allocation2 + $0xa] sm:$0xff] }
 0x121   :  { %681 = vmatmul.mubr.bf16.vlgmr.msra.gmra.mrb[12].mxu1 %v549_v32  ;;  %v833_v9 = vpack.c.bf16 %v831_v7, %v830_v8 }
 0x122   :  { %780 = vmatpush1.bf16.msra.mxu1 %v1722_v25  ;;  %690 = vmatprep.mubr.bf16.mxu1 %v1826_v2  ;;  %v1785_v25 = vld [vmem:[%s2267_s5 + $0x38] sm:$0xff]  }
 0x123   :  { %781 = vmatprep.subr.bf16.mxu1 %v1727_v33  ;;  %v548_v36 = vld [vmem:[#allocation2 + $0x11] sm:$0x3] }
 0x124   :  { %v550_v38 = vpack.c.bf16 %v548_v36, %v548_v36  ;;  %v832_v10 = vld [vmem:[#allocation2 + $0x12] sm:$0x3] }
 0x125   :  { %v834_v11 = vpack.c.bf16 %v832_v10, %v832_v10 }
 0x126   :  { %782 = vmatpush1.bf16.msra.mxu1 %v1725_v34 }
 0x127   :  { %783 = vmatprep.subr.bf16.mxu1 %v1730_v35 }
 0x129   :  { %691 = vmatmul.mubr.bf16.gmra.mrb[16].mxu1 %v550_v38 }
 0x12a   :  { %784 = vmatpush1.bf16.msra.mxu1 %v1728_v37  ;;  %811 = vmatprep.mubr.bf16.mxu1 %v1826_v2 }
 0x12b   :  { %785 = vmatprep.subr.bf16.mxu1 %v1733_v39 }
 0x12e   :  { %786 = vmatpush1.bf16.msra.mxu1 %v1731_v40 }
 0x12f   :  { %787 = vmatprep.subr.bf16.mxu1 %v1736_v41  ;;  %v989_v41 = vld [vmem:[%s2266_s4] sm:$0x3] }
 0x132   :  { %788 = vmatpush1.bf16.msra.mxu1 %v1734_v42  ;;  %v994_v42 = vrot.slane %v989_v41, %v453_v24 }
 0x133   :  { %789 = vmatprep.subr.bf16.mxu1 %v1739_v43  ;;  %v998_v43 = vrot.slane %v989_v41, %v457_v27 }
 0x136   :  { %790 = vmatpush1.bf16.msra.mxu1 %v1737_v44 }
 0x137   :  { %791 = vmatprep.subr.bf16.mxu1 %v1742_v45 }
 0x13a   :  { %792 = vmatpush1.bf16.msra.mxu1 %v1740_v46 }
 0x13b   :  { %793 = vmatprep.subr.bf16.mxu1 %v1745_v47 }
 0x13e   :  { %794 = vmatpush1.bf16.msra.mxu1 %v1743_v48 }
 0x13f   :  { %932 = vmatprep.subr.bf16.mxu1 %v1748_v49 }
 0x141   :  { %812 = vmatmul.mubr.bf16.vlgmr.msra.gmra.mrb[12].mxu1 %v528_v53 }
 0x142   :  { %933 = vmatpush1.bf16.msra.mxu1 %v1746_v52  ;;  %821 = vmatprep.mubr.bf16.mxu1 %v1826_v2 }
 0x143   :  { %934 = vmatprep.subr.bf16.mxu1 %v1751_v54 }
 0x146   :  { %935 = vmatpush1.bf16.msra.mxu1 %v1749_v55 }
 0x147   :  { %936 = vmatprep.subr.bf16.mxu1 %v1754_v56 }
 0x149   :  { %822 = vmatmul.mubr.bf16.gmra.mrb[20].mxu1 %v529_v59 }
 0x14a   :  { %937 = vmatpush1.bf16.msra.mxu1 %v1752_v58  ;;  %964 = vmatprep.mubr.bf16.mxu1 %v1826_v2 }
 0x14b   :  { %938 = vmatprep.subr.bf16.mxu1 %v1757_v60 }
 0x14e   :  { %939 = vmatpush1.bf16.msra.mxu1 %v1755_v61 }
 0x14f   :  { %940 = vmatprep.subr.bf16.mxu1 %v1760_v62 }
 0x152   :  { %941 = vmatpush1.bf16.msra.mxu1 %v1758_v63 }
 0x153   :  { %942 = vmatprep.subr.bf16.mxu1 %v1763_v0 }
 0x156   :  { %943 = vmatpush1.bf16.msra.mxu1 %v1761_v1 }
 0x157   :  { %944 = vmatprep.subr.bf16.mxu1 %v1766_v3 }
 0x15a   :  { %945 = vmatpush1.bf16.msra.mxu1 %v1764_v4 }
 0x15b   :  { %946 = vmatprep.subr.bf16.mxu1 %v1769_v5 }
 0x15e   :  { %947 = vmatpush1.bf16.msra.mxu1 %v1767_v6 }
 0x161   :  { %965 = vmatmul.mubr.bf16.vlgmr.msra.gmra.mrb[12].mxu1 %v833_v9 }
 0x162   :  { %974 = vmatprep.mubr.bf16.mxu1 %v1826_v2  ;;  %v1773_v2 = vld [vmem:[%s2267_s5 + $0x8] sm:$0xff]  }
 0x163   :  { %1589 = vmatpush3.bf16.msra.mxu0 %v1773_v2 }
 0x164   :  { %1590 = vmatprep.subr.bf16.mxu0 %v1774_v15 }
 0x167   :  { %1591 = vmatpush3.bf16.msra.mxu0 %v1775_v17  ;;  %v1787_v17 = vld [vmem:[%s2267_s5 + $0x80] sm:$0xff]  }
 0x168   :  { %1592 = vmatprep.subr.bf16.mxu0 %v1776_v18 }
 0x169   :  { %975 = vmatmul.mubr.bf16.gmra.mrb[24].mxu1 %v834_v11 }
 0x16b   :  { %1593 = vmatpush3.bf16.msra.mxu0 %v1777_v19  ;;  %v1788_v19 = vld [vmem:[%s2267_s5 + $0xc8] sm:$0xff]  }
 0x16c   :  { %1594 = vmatprep.subr.bf16.mxu0 %v1778_v20 }
 0x16f   :  { %1595 = vmatpush3.bf16.msra.mxu0 %v1779_v22  ;;  %v1789_v22 = vld [vmem:[%s2267_s5 + $0x88] sm:$0xff]  }
 0x170   :  { %1596 = vmatprep.subr.bf16.mxu0 %v1780_v23 }
 0x173   :  { %1597 = vmatpush3.bf16.msra.mxu0 %v1781_v26  ;;  %v1790_v26 = vld [vmem:[%s2267_s5 + $0xd0] sm:$0xff]  }
 0x174   :  { %1598 = vmatprep.subr.bf16.mxu0 %v1782_v21 }
 0x177   :  { %1599 = vmatpush3.bf16.msra.mxu0 %v1783_v28 }
 0x178   :  { %1600 = vmatprep.subr.bf16.mxu0 %v1784_v29 }
 0x17b   :  { %1601 = vmatpush3.bf16.msra.mxu0 %v1785_v25  ;;  %v1791_v25 = vld [vmem:[%s2267_s5 + $0x90] sm:$0xff]  }
 0x17c   :  { %1608 = vmatprep.subr.bf16.mxu0 %v1786_v30  ;;  %v1792_v30 = vld [vmem:[%s2267_s5 + $0xd8] sm:$0xff]  }
 0x1fc   :  { %v692_v31 = vpop.f32.mrb[16].mxu1 }
 0x1fd   :  { %v694_v32 = vpop.f32.mrb[17].mxu1 }
 0x1fe   :  { %v696_v33 = vpop.f32.mrb[18].mxu1 }
 0x1ff   :  { %v697_v34 = vpop.f32.mrb[19].mxu1  ;;  %v1795_v33 = vld [vmem:[%s2267_s5 + $0xa0] sm:$0xff]  }
 0x200   :  { %v1796_v34 = vld [vmem:[%s2267_s5 + $0xe8] sm:$0xff]  }
 0x21c   :  { %v823_v35 = vpop.f32.mrb[20].mxu1 }
 0x21d   :  { %v824_v36 = vadd.f32 %v823_v35, %v692_v31  ;;  %v825_v37 = vpop.f32.mrb[21].mxu1  ;;  %v1793_v31 = vld [vmem:[%s2267_s5 + $0x98] sm:$0xff]   ;;  %v1797_v35 = vld [vmem:[%s2267_s5 + $0xa8] sm:$0xff]  }
 0x21e   :  { %v826_v38 = vadd.f32 %v825_v37, %v694_v32  ;;  %v827_v39 = vpop.f32.mrb[22].mxu1  ;;  %v1794_v32 = vld [vmem:[%s2267_s5 + $0xe0] sm:$0xff]   ;;  %v1799_v37 = vld [vmem:[%s2267_s5 + $0xb0] sm:$0xff]  }
 0x21f   :  { %v828_v40 = vpop.f32.mrb[23].mxu1  ;;  %v1801_v39 = vld [vmem:[%s2267_s5 + $0xb8] sm:$0xff]  }
 0x234   :  { %v966_v44 = vpop.f32.mrb[12].mxu1 }
 0x235   :  { %v1001_v45 = vadd.f32 %v994_v42, %v966_v44  ;;  %v968_v46 = vpop.f32.mrb[13].mxu1 }
 0x236   :  { %v1002_v47 = vadd.f32 %v998_v43, %v968_v46  ;;  %v970_v48 = vpop.f32.mrb[14].mxu1  ;;  %v1553_v46 = vld [vmem:[%s2268_s6] ss:$0 sm:$0xff] }
 0x237   :  { %v1007_v49 = vmax.f32 %v1001_v45, 0.0  ;;  %v1003_v50 = vadd.f32 %v994_v42, %v970_v48  ;;  %v972_v51 = vpop.f32.mrb[15].mxu1 }
 0x238   :  { %v1008_v52 = vmax.f32 %v1002_v47, 0.0  ;;  %v1004_v53 = vadd.f32 %v998_v43, %v972_v51 }
 0x239   :  { %v1009_v54 = vmax.f32 %v1003_v50, 0.0 }
 0x23a   :  { %v1013_v55 = vmax.f32 %v1007_v49, %v1008_v52  ;;  %v1010_v56 = vmax.f32 %v1004_v53, 0.0 }
 0x23c   :  { %v1017_v57 = vrot.slane %v1013_v55, 1  ;;  %v1014_v58 = vmax.f32 %v1009_v54, %v1010_v56  ;;  %v976_v59 = vpop.f32.mrb[24].mxu1 }
 0x23d   :  { %v987_v24 = vadd.f32 %v976_v59, %v824_v36  ;;  %v978_v60 = vpop.f32.mrb[25].mxu1  ;;  %v1798_v36 = vld [vmem:[%s2267_s5 + $0xf0] sm:$0xff]  }
 0x23e   :  { %v1019_v16 = vmax.f32 %v1013_v55, %v1017_v57  ;;  %v1028_v27 = vrot.slane %v1014_v58, 1  ;;  %v988_v61 = vadd.f32 %v978_v60, %v826_v38  ;;  %v980_v62 = vpop.f32.mrb[26].mxu1  ;;  %v1800_v38 = vld [vmem:[%s2267_s5 + $0xf8] sm:$0xff]   ;;  %s1802_s5 = scalar_lea.vmem %s1409_s20, 32 }
 0x23f   :  { %v1005_v63 = vadd.f32 %v994_v42, %v987_v24  ;;  %v981_v0 = vpop.f32.mrb[27].mxu1  ;;  %p1803_p0 = scmp.ne.s32.totalorder %s1409_s20, %s1802_s5  ;;  %p1808_p2 = scmp.lt.s32.totalorder %s1802_s5, %s1802_s5 }
 0x240   :  { %v1030_v1 = vmax.f32 %v1014_v58, %v1028_v27  ;;  %v1006_v3 = vadd.f32 %v998_v43, %v988_v61  ;;  %v1021_v5 = vrot.slane %v1019_v16, 2  ;;  %v1023_v6 = vrot.slane %v1019_v16, 4 }
 0x241   :  { %v1011_v4 = vmax.f32 %v1005_v63, 0.0  ;;  %v1025_v21 = vrot.slane %v1019_v16, 6  ;;  %p1809_p3 = por %p1808_p2, %p1807_p1 }
 0x242   :  { %v1040_v7 = vrot.slane %v1030_v1, 1  ;;  %v1551_v8 = vrot.slane %v1030_v1, 5  ;;  %v1012_v9 = vmax.f32 %v1006_v3, 0.0  ;;  %v1550_v10 = vrot.slane %v1030_v1, 3 }
 0x243   :  { %p1810_p4 = pnand %p1809_p3, %p1803_p0 }
 0x244   :  { %v1015_v11 = vmax.f32 %v1011_v4, %v1012_v9  ;;  %v1050_v12 = vsel %vm1048_vm3, %v1021_v5, %v1550_v10  ;;  %v1049_v13 = vsel %vm1048_vm3, %v1019_v16, %v1040_v7  ;;  %v1051_v14 = vsel %vm1048_vm3, %v1023_v6, %v1551_v8 }
 0x245   :  { %v1054_v2 = vpack.c.bf16 %v1050_v12, %v1050_v12  ;;  %v1053_v15 = vpack.c.bf16 %v1049_v13, %v1049_v13  ;;  %v1055_v40 = vpack.c.bf16 %v1051_v14, %v1051_v14 }
 0x246   :  { %v1032_v18 = vrot.slane %v1015_v11, 1 }
 0x247   :  { %1352 = vmatprep.mubr.bf16.mxu0 %v1054_v2 }
 0x248   :  { %v1034_v20 = vmax.f32 %v1015_v11, %v1032_v18  ;;  %1353 = vmatmul.mubr.bf16.vlgmr.msra.gmra.mrb[16].mxu0 %v1053_v15 }
 0x249   :  { %1609 = vmatpush3.bf16.msra.mxu0 %v1787_v17 }
 0x24a   :  { %v1552_v23 = vrot.slane %v1034_v20, 7  ;;  %1610 = vmatprep.subr.bf16.mxu0 %v1788_v19 }
 0x24c   :  { %v1052_v28 = vsel %vm1048_vm3, %v1025_v21, %v1552_v23 }
 0x24d   :  { %1611 = vmatpush3.bf16.msra.mxu0 %v1789_v22  ;;  %v1056_v29 = vpack.c.bf16 %v1052_v28, %v1052_v28 }
 0x24e   :  { %1612 = vmatprep.subr.bf16.mxu0 %v1790_v26 }
 0x24f   :  { %1392 = vmatprep.mubr.bf16.mxu0 %v1056_v29 }
 0x251   :  { %1613 = vmatpush3.bf16.msra.mxu0 %v1791_v25 }
 0x252   :  { %1614 = vmatprep.subr.bf16.mxu0 %v1792_v30 }
 0x255   :  { %1615 = vmatpush3.bf16.msra.mxu0 %v1793_v31 }
 0x256   :  { %1616 = vmatprep.subr.bf16.mxu0 %v1794_v32 }
 0x259   :  { %1617 = vmatpush3.bf16.msra.mxu0 %v1795_v33 }
 0x25a   :  { %1618 = vmatprep.subr.bf16.mxu0 %v1796_v34 }
 0x25d   :  { %1619 = vmatpush3.bf16.msra.mxu0 %v1797_v35 }
 0x25e   :  { %1620 = vmatprep.subr.bf16.mxu0 %v1798_v36 }
 0x261   :  { %1621 = vmatpush3.bf16.msra.mxu0 %v1799_v37 }
 0x262   :  { %1622 = vmatprep.subr.bf16.mxu0 %v1800_v38 }
 0x265   :  { %1623 = vmatpush3.bf16.msra.mxu0 %v1801_v39 }
 0x268   :  { %1393 = vmatmul.mubr.bf16.vlgmr.msra.gmra.mrb[20].mxu0 %v1055_v40 }
 0x31b   :  { %v1602_v41 = vpop.f32.mrb[16].mxu0 }
 0x31c   :  { %v1603_v42 = vpop.f32.mrb[17].mxu0 }
 0x31d   :  { %v1604_v43 = vadd.f32 %v1603_v42, %v1602_v41  ;;  %v1605_v44 = vpop.f32.mrb[18].mxu0 }
 0x31e   :  { %v1606_v45 = vpop.f32.mrb[19].mxu0 }
 0x31f   :  { %v1355_v49 = vadd.f32 %v1604_v43, %v1553_v46 }
 0x33b   :  { %v1624_v47 = vpop.f32.mrb[20].mxu0 }
 0x33c   :  { %v1625_v48 = vpop.f32.mrb[21].mxu0 }
 0x33d   :  { %v1626_v50 = vadd.f32 %v1625_v48, %v1624_v47  ;;  %v1627_v51 = vpop.f32.mrb[22].mxu0 }
 0x33e   :  { %v1628_v52 = vpop.f32.mrb[23].mxu0 }
 0x33f   :  { %v1395_v53 = vadd.f32 %v1626_v50, %v1355_v49 }
 0x341   :  { %1401 = vst.msk [vmem:[#allocation3] sm:$0x3] %vm1400_vm4, %v1395_v53 }
 0x342   :  { %1813 = shalt.err (!%p1810_p4)
}
 0x343   :  { %s1814_s22 = scalar_lea.hbm %s2269_s7, 32 }
 0x344   :  { %p1815_p5 = scmp.ne.s32.totalorder %s2269_s7, %s1814_s22  ;;  %p1818_p6 = scmp.lt.u32.totalorder %s1814_s22, %s2269_s7 }
 0x346   :  { %p1820_p7 = pnand %p1818_p6, %p1815_p5 }
 0x348   :  { %1823 = shalt.err (!%p1820_p7)
}
 0x349   :  { %1411 = dma.vmem_to_hbm [thread:$0]  %s1409_s20, 32, %s2269_s7, [#allocation4]  }
 0x34a   :  { %1824 = dma.done.wait [#allocation4], 32  }
 0x34b   :  { %1825 = vsyncadd [#allocation4], 4294967264 }
 0x34c   :  { %1415 = vsyncpa [#allocation4], 1 }

</bundles_post_ra>
